<compile_context>
chip_gen: v5e
topology: v5e:2x2
jax: 0.10.0
libtpu: 0.0.40
codegen_flags: <defaults>
</compile_context>

<pallas_src>
import numpy as np
import jax
import jax.numpy as jnp
from jax.experimental import pallas as pl
from jax.experimental.pallas import tpu as pltpu


LANE = 128       # lane padding unit for in/out feature dims
SRC_TILE = 256   # src-row tile (k axis of the aggregation; multiple of 32 for int8)


def _round_up(x, m):
    return ((x + m - 1) // m) * m


def _vmem_limit_bytes():
    # Per-generation cap: v7x has 64 MiB/TC (vs 128 on v5e/v6e).  Our per-tile
    # footprint is < 2 MiB double-buffered, so a conservative cap is plenty.
    try:
        info = pltpu.get_tpu_info()
        cap = int(getattr(info, "vmem_capacity_bytes", 128 * 1024 * 1024))
        return max(32 * 1024 * 1024, min(48 * 1024 * 1024, cap // 2))
    except Exception:
        return 32 * 1024 * 1024


# ----------------------------------------------------------------------------
# Kernel 1 (one call per dst group): fused per-etype Linear
#   Wh_cat[j-th row tile] = X[feat_blk[j]] @ W^T[member[j]] + b[member[j]]
# bf16 operands / f32 accumulation; writes the concatenated Wh buffer directly
# (no wrapper-side re-pad / stack).
# ----------------------------------------------------------------------------
def _linear_kernel(feat_blk_ref, member_ref, x_ref, w_ref, b_ref, o_ref):
    del feat_blk_ref, member_ref  # consumed by the index_maps only
    acc = jnp.dot(x_ref[...], w_ref[0], preferred_element_type=jnp.float32)
    o_ref[...] = (acc + b_ref[0]).astype(o_ref.dtype)


def linear_concat_pallas(feat_blk, member, x_all, w_stack, b_stack, *, out_p,
                         tile=SRC_TILE):
    """feat_blk[j]: block index into x_all for concatenated row-tile j.
    member[j]: which etype's (W^T, b) row-tile j uses."""
    n_tiles = int(feat_blk.shape[0])
    in_p = x_all.shape[1]
    return pl.pallas_call(
        _linear_kernel,
        out_shape=jax.ShapeDtypeStruct((n_tiles * tile, out_p), jnp.bfloat16),
        grid_spec=pltpu.PrefetchScalarGridSpec(
            num_scalar_prefetch=2,
            grid=(n_tiles,),
            in_specs=[
                pl.BlockSpec((tile, in_p), lambda j, fb, mb: (fb[j], 0)),
                pl.BlockSpec((1, in_p, out_p), lambda j, fb, mb: (mb[j], 0, 0)),
                pl.BlockSpec((1, 1, out_p), lambda j, fb, mb: (mb[j], 0, 0)),
            ],
            out_specs=pl.BlockSpec((tile, out_p), lambda j, fb, mb: (j, 0)),
        ),
        compiler_params=pltpu.CompilerParams(
            dimension_semantics=("parallel",),
            vmem_limit_bytes=_vmem_limit_bytes(),
        ),
    )(feat_blk, member, x_all, w_stack, b_stack)


# ----------------------------------------------------------------------------
# Kernel 2 (one call per dst group): DMA-gated block-sparse aggregation
#   out[dst tile i] = sum over nonzero adjacency tiles t of
#                     inv_deg[member(t), i] * (counts[i, t] @ Wh_cat[t])
# grid = (i [parallel], nz-slot k [arbitrary]); the k index_maps read the
# compacted nonzero-tile list from SMEM so empty tiles are never fetched.
# The f32 output block is resident across k (index_map depends only on i,
# which is the OUTER grid axis) and accumulated into directly.
# ----------------------------------------------------------------------------
def _agg_kernel(tile_list_ref, nnz_ref, member_list_ref,
                a_ref, wh_ref, inv_ref, o_ref):
    i = pl.program_id(0)
    k = pl.program_id(1)

    @pl.when(k == 0)
    def _():
        o_ref[...] = jnp.zeros_like(o_ref)

    # Tail slots (k >= nnz[i]) repeat the last valid tile (same block index,
    # so no extra DMA) and are skipped here.
    @pl.when(k < nnz_ref[i])
    def _():
        # int8 counts -> bf16 on the VPU (exact for small integers), MXU dot,
        # then the per-(etype, dst-row) mean scale in f32.
        counts = a_ref[...].astype(jnp.float32).astype(jnp.bfloat16)
        part = jnp.dot(counts, wh_ref[...], preferred_element_type=jnp.float32)
        o_ref[...] += inv_ref[0] * part


def aggregate_group_pallas(tile_list, nnz, member_list, counts, wh_cat, inv_deg,
                           *, tm, tk=SRC_TILE):
    dst_p, _ = counts.shape
    out_p = wh_cat.shape[1]
    n_i = dst_p // tm
    n_slots = int(tile_list.shape[0]) // n_i
    return pl.pallas_call(
        _agg_kernel,
        out_shape=jax.ShapeDtypeStruct((dst_p, out_p), jnp.float32),
        grid_spec=pltpu.PrefetchScalarGridSpec(
            num_scalar_prefetch=3,
            grid=(n_i, n_slots),
            in_specs=[
                pl.BlockSpec((tm, tk),
                             lambda i, k, tl, nz, ml: (i, tl[i * n_slots + k])),
                pl.BlockSpec((tk, out_p),
                             lambda i, k, tl, nz, ml: (tl[i * n_slots + k], 0)),
                pl.BlockSpec((1, tm, 1),
                             lambda i, k, tl, nz, ml: (ml[i * n_slots + k], i, 0)),
            ],
            out_specs=pl.BlockSpec((tm, out_p),
                                   lambda i, k, tl, nz, ml: (i, 0)),
        ),
        compiler_params=pltpu.CompilerParams(
            dimension_semantics=("parallel", "arbitrary"),
            vmem_limit_bytes=_vmem_limit_bytes(),
        ),
    )(tile_list, nnz, member_list, counts, wh_cat, inv_deg)


# ----------------------------------------------------------------------------
# Layer wrapper
# ----------------------------------------------------------------------------
class HeteroRGCNLayerPallas:
    """Pallas implementation of HeteroRGCNLayer.forward."""

    def __init__(self, in_size, out_size, etypes, key, *, lane=LANE):
        self.in_size = in_size
        self.out_size = out_size
        self.in_p = _round_up(in_size, lane)
        self.out_p = _round_up(out_size, lane)
        self.params = {}     # f32 reference params: W (out, in), b (out,)
        self.packed_w = {}   # W^T padded bf16 (in_p, out_p)
        self.packed_b = {}   # bias padded f32 (1, out_p)
        for name in etypes:
            key, kw, kb = jax.random.split(key, 3)
            bound = 1.0 / (in_size ** 0.5)
            w = jax.random.uniform(kw, (out_size, in_size), jnp.float32, -bound, bound)
            b = jax.random.uniform(kb, (out_size,), jnp.float32, -bound, bound)
            self.params[name] = (w, b)
            wt = jnp.zeros((self.in_p, self.out_p), jnp.float32)
            wt = wt.at[:in_size, :out_size].set(w.T)
            bp = jnp.zeros((1, self.out_p), jnp.float32).at[0, :out_size].set(b)
            self.packed_w[name] = wt.astype(jnp.bfloat16)
            self.packed_b[name] = bp

    # --- graph-structural precompute (cache this across forward calls) ------
    def prepare_graph(self, canonical_etypes, edges, num_nodes):
        """Builds adjacency counts, compacted nonzero-tile lists, per-etype
        mean scales and tile->weight routing.  Depends only on the graph.
        # TODO(synk): for very large graphs build the per-tile structure from
        # CSR (or cache per graph) instead of the dense O(N^2) counts scatter.
        """
        active = [(st, et, dt) for (st, et, dt) in canonical_etypes
                  if int(np.asarray(edges[et][0]).shape[0]) != 0]

        # global padded feature layout (one pad per src node type, shared)
        src_types = sorted({st for st, _, _ in active})
        node_pad, feat_off = {}, {}
        off = 0
        for st in src_types:
            node_pad[st] = _round_up(max(num_nodes[st], 1), SRC_TILE)
            feat_off[st] = off
            off += node_pad[st]
        feat_total = off

        groups = {}
        for st, et, dt in active:
            groups.setdefault(dt, []).append((st, et))

        plan_groups = {}
        for dt, members in groups.items():
            n_dst = num_nodes[dt]
            # Bigger dst tiles amortize Wh re-reads / per-step overhead, but
            # keep >=2 parallel i tiles where possible (v7x has 2 TCs).
            tm = 512 if _round_up(n_dst, 512) >= 1024 else 256
            dst_p = _round_up(max(n_dst, 1), tm)
            n_i = dst_p // tm

            # concatenated reduction axis: one segment per member etype
            seg_off, k_total = [], 0
            for st, _ in members:
                seg_off.append(k_total)
                k_total += node_pad[st]
            n_k = k_total // SRC_TILE

            # routing tables for the fused per-group Linear
            feat_blk = np.zeros((n_k,), np.int32)
            member_of_tile = np.zeros((n_k,), np.int32)
            for m, (st, _) in enumerate(members):
                t0 = seg_off[m] // SRC_TILE
                nt = node_pad[st] // SRC_TILE
                feat_blk[t0:t0 + nt] = feat_off[st] // SRC_TILE + np.arange(nt)
                member_of_tile[t0:t0 + nt] = m

            # dense int8 counts (edge multiplicities; assumes <128 parallel
            # edges per pair) + per-(etype, dst-row) mean scale
            counts = np.zeros((dst_p, k_total), np.int8)
            inv_deg = np.zeros((len(members), dst_p, 1), np.float32)
            for m, (st, et) in enumerate(members):
                src = np.asarray(edges[et][0])
                dst = np.asarray(edges[et][1])
                np.add.at(counts, (dst, src + seg_off[m]), 1)
                deg = np.bincount(dst, minlength=dst_p)[:dst_p].astype(np.float32)
                inv_deg[m, :, 0] = np.where(deg > 0, 1.0 / np.maximum(deg, 1.0), 0.0)

            # compacted nonzero-tile lists -> DMA-level block sparsity
            occ = counts.reshape(n_i, tm, n_k, SRC_TILE).any(axis=(1, 3))
            nnz = occ.sum(axis=1).astype(np.int32)
            max_nnz = max(int(nnz.max()), 1)
            tile_list = np.zeros((n_i, max_nnz), np.int32)
            member_list = np.zeros((n_i, max_nnz), np.int32)
            for i in range(n_i):
                nz = np.nonzero(occ[i])[0].astype(np.int32)
                if nz.size:
                    tile_list[i, :nz.size] = nz
                    tile_list[i, nz.size:] = nz[-1]           # tail: repeat last (skipped)
                    member_list[i, :nz.size] = member_of_tile[nz]
                    member_list[i, nz.size:] = member_of_tile[nz[-1]]

            plan_groups[dt] = dict(
                tm=tm, dst_p=dst_p, n_dst=n_dst,
                counts=jnp.asarray(counts),
                inv_deg=jnp.asarray(inv_deg),
                tile_list=jnp.asarray(tile_list.reshape(-1)),
                nnz=jnp.asarray(nnz),
                member_list=jnp.asarray(member_list.reshape(-1)),
                feat_blk=jnp.asarray(feat_blk),
                member_of_tile=jnp.asarray(member_of_tile),
                w_stack=jnp.stack([self.packed_w[et] for _, et in members]),
                b_stack=jnp.stack([self.packed_b[et] for _, et in members]),
            )

        return dict(node_pad=node_pad, feat_off=feat_off, feat_total=feat_total,
                    src_types=src_types, groups=plan_groups)

    # --- forward -------------------------------------------------------------
    def forward(self, canonical_etypes, edges, num_nodes, feat_dict, plan=None):
        if plan is None:
            plan = self.prepare_graph(canonical_etypes, edges, num_nodes)

        # pack/pad all src-type features once into a single bf16 buffer
        blocks = []
        for st in plan["src_types"]:
            f = feat_dict[st].astype(jnp.bfloat16)
            blocks.append(jnp.pad(
                f, ((0, plan["node_pad"][st] - f.shape[0]),
                    (0, self.in_p - self.in_size))))
        x_all = jnp.concatenate(blocks, axis=0)

        out = {}
        for dt, g in plan["groups"].items():
            # Kernel 1: fused Linear for all etypes of this dst group
            wh_cat = linear_concat_pallas(
                g["feat_blk"], g["member_of_tile"], x_all,
                g["w_stack"], g["b_stack"], out_p=self.out_p)

            # Kernel 2: DMA-gated block-sparse aggregation
            h = aggregate_group_pallas(
                g["tile_list"], g["nnz"], g["member_list"],
                g["counts"], wh_cat, g["inv_deg"], tm=g["tm"])
            out[dt] = h[:g["n_dst"], :self.out_size]
        # Only node types that actually received messages are returned
        # (matches DGL dstdata['h']).
        return out


if __name__ == "__main__":
    key = jax.random.PRNGKey(0)
    in_size, out_size = 32, 32
    num_nodes = {"drug": 16, "gene": 24}
    canonical_etypes = [
        ("drug", "drug_gene", "gene"),
        ("gene", "rev_drug_gene", "drug"),
        ("gene", "gene_gene", "gene"),
    ]
    etypes = [e for _, e, _ in canonical_etypes]

    k_feat_d, k_feat_g, k_edges, k_params = jax.random.split(key, 4)
    feat_dict = {
        "drug": jax.random.normal(k_feat_d, (num_nodes["drug"], in_size), jnp.float32),
        "gene": jax.random.normal(k_feat_g, (num_nodes["gene"], in_size), jnp.float32),
    }

    n_edges = {"drug_gene": 40, "rev_drug_gene": 40, "gene_gene": 30}
    edge_keys = jax.random.split(k_edges, 2 * len(canonical_etypes))
    edges = {}
    for i, (st, et, dt) in enumerate(canonical_etypes):
        src = jax.random.randint(edge_keys[2 * i], (n_edges[et],), 0, num_nodes[st])
        dst = jax.random.randint(edge_keys[2 * i + 1], (n_edges[et],), 0, num_nodes[dt])
        edges[et] = (src, dst)

    layer = HeteroRGCNLayerPallas(in_size, out_size, etypes, k_params)
    # Graph structure is precomputed once and reused across forward() calls.
    plan = layer.prepare_graph(canonical_etypes, edges, num_nodes)
    out = layer.forward(canonical_etypes, edges, num_nodes, feat_dict, plan=plan)
    out = jax.block_until_ready(out)

    # Plain-JAX reference with the SAME precision policy (bf16 operands, f32
    # accumulation, integer counts + f32 1/deg scale) to isolate kernel bugs.
    ref = {}
    for st, et, dt in canonical_etypes:
        src, dsti = edges[et]
        if src.shape[0] == 0:
            continue
        w, b = layer.params[et]
        x_b = feat_dict[st].astype(jnp.bfloat16)
        w_b = w.T.astype(jnp.bfloat16)
        wh_r = (jnp.dot(x_b, w_b, preferred_element_type=jnp.float32) + b
                ).astype(jnp.bfloat16)
        counts = jnp.zeros((num_nodes[dt], num_nodes[st]), jnp.float32
                           ).at[dsti, src].add(1.0)
        deg = counts.sum(axis=1, keepdims=True)
        inv = jnp.where(deg > 0, 1.0 / jnp.maximum(deg, 1.0), 0.0)
        contrib = inv * jnp.dot(counts.astype(jnp.bfloat16), wh_r,
                                preferred_element_type=jnp.float32)
        ref[dt] = ref.get(dt, jnp.zeros((num_nodes[dt], out_size), jnp.float32)) + contrib

    assert set(out.keys()) == set(ref.keys()), (set(out.keys()), set(ref.keys()))
    for nt in ref:
        assert out[nt].shape == ref[nt].shape, nt
        assert jnp.allclose(out[nt], ref[nt], atol=1e-2, rtol=1e-2), nt

    print("KERNEL_OK")
</pallas_src>

<mosaic_0001>
module attributes {stable_mosaic.version = 11 : i64} {
  func.func @_linear_kernel(%arg0: i32, %arg1: memref<2xi32, #tpu.memory_space<smem>>, %arg2: memref<2xi32, #tpu.memory_space<smem>>, %arg3: memref<256x128xbf16, #tpu.memory_space<vmem>>, %arg4: memref<1x128x128xbf16, #tpu.memory_space<vmem>>, %arg5: memref<1x1x128xf32, #tpu.memory_space<vmem>>, %arg6: memref<256x128xbf16, #tpu.memory_space<vmem>>) attributes {dimension_semantics = [#tpu.dimension_semantics<parallel>], iteration_bounds = array<i64: 2>, scalar_prefetch = 2 : i64, scratch_operands = 0 : i64, tpu.core_type = #tpu.core_type<tc>, window_params = [{transform_indices = @transform_0, window_bounds = array<i64: 256, 128>}, {transform_indices = @transform_1, window_bounds = array<i64: 1, 128, 128>}, {transform_indices = @transform_2, window_bounds = array<i64: 1, 1, 128>}, {transform_indices = @transform_3, window_bounds = array<i64: 256, 128>}]} {
    %c0 = arith.constant 0 : index
    %c0_0 = arith.constant 0 : index
    %0 = vector.load %arg3[%c0, %c0_0] : memref<256x128xbf16, #tpu.memory_space<vmem>>, vector<256x128xbf16>
    %c0_1 = arith.constant 0 : index
    %c0_2 = arith.constant 0 : index
    %c0_3 = arith.constant 0 : index
    %1 = vector.load %arg4[%c0_1, %c0_2, %c0_3] : memref<1x128x128xbf16, #tpu.memory_space<vmem>>, vector<1x128x128xbf16>
    %2 = vector.shape_cast %1 : vector<1x128x128xbf16> to vector<128x128xbf16>
    %cst = arith.constant dense<0.000000e+00> : vector<256x128xf32>
    %3 = tpu.matmul %0, %2, %cst {dimension_numbers = #tpu.dot_dimension_numbers<[1], [0], [0], [1], [0, 0, 1, 1], [], []>} : vector<256x128xbf16>, vector<128x128xbf16>, vector<256x128xf32> -> vector<256x128xf32>
    %c0_4 = arith.constant 0 : index
    %c0_5 = arith.constant 0 : index
    %c0_6 = arith.constant 0 : index
    %4 = vector.load %arg5[%c0_4, %c0_5, %c0_6] : memref<1x1x128xf32, #tpu.memory_space<vmem>>, vector<1x1x128xf32>
    %5 = vector.shape_cast %4 : vector<1x1x128xf32> to vector<1x128xf32>
    %6 = vector.broadcast %5 : vector<1x128xf32> to vector<256x128xf32>
    %7 = arith.addf %3, %6 : vector<256x128xf32>
    %8 = arith.truncf %7 : vector<256x128xf32> to vector<256x128xbf16>
    %c0_7 = arith.constant 0 : index
    %c0_8 = arith.constant 0 : index
    %9 = vector.load %arg6[%c0_7, %c0_8] : memref<256x128xbf16, #tpu.memory_space<vmem>>, vector<256x128xbf16>
    tpu.vector_store %arg6[%c0_7, %c0_8], %8 {strides = array<i32>} : memref<256x128xbf16, #tpu.memory_space<vmem>>, vector<256x128xbf16>,
    return
  }
  func.func @transform_0(%arg0: i32, %arg1: memref<2xi32, #tpu.memory_space<smem>>, %arg2: memref<2xi32, #tpu.memory_space<smem>>) -> (i32, i32) {
    %0 = arith.index_cast %arg0 : i32 to index
    %1 = memref.load %arg1[%0] : memref<2xi32, #tpu.memory_space<smem>>
    %c0_i32 = arith.constant 0 : i32
    %c0_i32_0 = arith.constant 0 : i32
    return %1, %c0_i32 : i32, i32
  }
  func.func @transform_1(%arg0: i32, %arg1: memref<2xi32, #tpu.memory_space<smem>>, %arg2: memref<2xi32, #tpu.memory_space<smem>>) -> (i32, i32, i32) {
    %0 = arith.index_cast %arg0 : i32 to index
    %1 = memref.load %arg2[%0] : memref<2xi32, #tpu.memory_space<smem>>
    %c0_i32 = arith.constant 0 : i32
    %c0_i32_0 = arith.constant 0 : i32
    %c0_i32_1 = arith.constant 0 : i32
    return %1, %c0_i32, %c0_i32_0 : i32, i32, i32
  }
  func.func @transform_2(%arg0: i32, %arg1: memref<2xi32, #tpu.memory_space<smem>>, %arg2: memref<2xi32, #tpu.memory_space<smem>>) -> (i32, i32, i32) {
    %0 = arith.index_cast %arg0 : i32 to index
    %1 = memref.load %arg2[%0] : memref<2xi32, #tpu.memory_space<smem>>
    %c0_i32 = arith.constant 0 : i32
    %c0_i32_0 = arith.constant 0 : i32
    %c0_i32_1 = arith.constant 0 : i32
    return %1, %c0_i32, %c0_i32_0 : i32, i32, i32
  }
  func.func @transform_3(%arg0: i32, %arg1: memref<2xi32, #tpu.memory_space<smem>>, %arg2: memref<2xi32, #tpu.memory_space<smem>>) -> (i32, i32) {
    %c0_i32 = arith.constant 0 : i32
    %c0_i32_0 = arith.constant 0 : i32
    return %arg0, %c0_i32 : i32, i32
  }
}

</mosaic_0001>

<bundles_post_ra>
// kernel: tpu_custom_call.1
= control target key start
LH: loop header
LB: loop body
LE: loop exit
PB: predicated region body
PF: predicated region fallthrough
CT: control target
= control target key end

     0   :  { %s1329_s24 = smov [#allocation3]   ;;  %s1330_s25 = smov [#allocation4]   ;;  %s1721_s0 = inlined_call_operand.hbm [shape: s32[2], index: 0, kind: input, shape index: {}]   ;;  %s1722_s2 = inlined_call_operand.hbm [shape: bf16[512,128], index: 2, kind: input, shape index: {}]   ;;  %s1723_s3 = inlined_call_operand.hbm [shape: bf16[2,128,128], index: 3, kind: input, shape index: {}]   ;;  %s1724_s4 = inlined_call_operand.vmem [shape: f32[2,1,128], index: 4, kind: input, shape index: {}]   ;;  %s1725_s5 = inlined_call_operand.hbm [shape: bf16[512,128], index: 5, kind: output, shape index: {}]   ;;  %s1726_s1 = inlined_call_operand.hbm [shape: s32[2], index: 1, kind: input, shape index: {}]  }
   0x1   :  { %1736 = sst [smem:[#allocation26_spill]] %s1722_s2  ;;  %s11_s20 = sshll.u32 %s1721_s0, 4  ;;  %s12_s20 = int_to_ptr.hbm [resolvable:$true] %s11_s20 }
   0x2   :  { %s16_s23 = sshll.u32 %s1726_s1, 4  ;;  %s17_s23 = int_to_ptr.hbm [resolvable:$true] %s16_s23 }
   0x3   :  { %14 = dma.hbm_to_smem %s12_s20, 16, %s1329_s24, [#allocation2] }
   0x4   :  { %19 = dma.hbm_to_smem %s17_s23, 16, %s1330_s25, [#allocation2] }
   0x5   :  { %1275 = dma.done.wait [#allocation2], 32 }
   0x6   :  { %1276 = vsyncadd [#allocation2], 4294967264 }
   0x7   :  { %22 = sfence }
   0x8   :  { %23 = vsyncpa [#allocation6], 0 }
   0x9   :  { %25 = vsyncpa [#allocation6 + $0x1], 0 }
   0xa   :  { %26 = vsyncpa [#allocation9], 0 }
   0xb   :  { %28 = vsyncpa [#allocation9 + $0x1], 0 }
   0xc   :  { %29 = vsyncpa [#allocation7], 0 }
   0xd   :  { %31 = vsyncpa [#allocation7 + $0x1], 0  ;;  %s1371_s0 = smov 0   ;;  %s1373_s26 = smov 0  }
   0xe   :  { %s1375_s1 = smov 0   ;;  %s1377_s27 = smov 0  }
   0xf   :  { %s1379_s28 = smov 0   ;;  %s1381_s29 = smov 0  }
  0x10   :  { %s1383_s30 = smov 0   ;;  %s1385_s6 = smov 0  }
  0x11   :  { %s1387_s7 = smov 0   ;;  %s1389_s8 = smov 0  }
  0x12 LB: > { %1737 = sst [smem:[#allocation19_spill]] %s1291_s0  ;;  %s1420_s9 = sadd.s32 4294967295, %s1327_s8   ;;  %s1327_s8 = sphi %s1389_s8, %s1777_s8   ;;  %s1323_s7 = sphi %s1387_s7, %s1768_s7   ;;  %s1319_s6 = sphi %s1385_s6, %s1776_s6   ;;  %s1315_s30 = sphi %s1383_s30, %s1775_s30   ;;  %s1311_s29 = sphi %s1381_s29, %s1774_s29   ;;  %s1307_s28 = sphi %s1379_s28, %s1773_s28   ;;  %s1303_s27 = sphi %s1377_s27, %s1772_s27   ;;  %s1299_s1 = sphi %s1375_s1, %s1771_s1   ;;  %s1295_s26 = sphi %s1373_s26, %s1770_s26   ;;  %s1291_s0 = sphi %s1371_s0, %s1769_s0  }
  0x13   : > { %1738 = sst [smem:[#allocation20_spill]] %s1299_s1  ;;  %s749_s10 = sadd.s32 4294967294, %s1327_s8  }
  0x14   : > { %1739 = sst [smem:[#allocation21_spill]] %s1323_s7  ;;  %s1424_s11 = sadd.s32 1, %s1327_s8  }
  0x15   : > { %s41_s12 = sld [smem:[#allocation3 + %s1327_s8]]  ;;  %s46_s14 = sadd.s32 1, %s1323_s7 }
  0x16   : > { %s42_s13 = sld [smem:[#allocation3 + %s1424_s11]]  ;;  %p53_p0 = scmp.ne.s32.totalorder %s1323_s7, %s1319_s6 }
  0x17   : > { %p1733_p1 = scmp.eq.s32.totalorder %s1327_s8, 0  ;;  %p59_p2 = scmp.ne.s32.totalorder %s1319_s6, %s1315_s30 }
  0x18   : > { %p60_p3 = scmp.eq.s32.totalorder %s1420_s9, 0  ;;  %s125_s16 = ssub.s32 %s1327_s8, %s1424_s11 }
  0x19   : > { %p1436_p4 = por %p1733_p1, %p53_p0  ;;  %p126_p6 = scmp.eq.s32.totalorder %s125_s16, 0 }
  0x1a   : > { %p1444_p5 = por %p60_p3, %p59_p2  ;;  %s128_s18 = sadd.s32 1, %s1299_s1 }
  0x1b   : > { %p138_p7 = scmp.ne.s32.totalorder %s1299_s1, %s1295_s26  ;;  %p139_p8 = scmp.eq.s32.totalorder %s1420_s9, 1 }
  0x1c   : > { %s43_s19 = ssub.s32 %s41_s12, %s42_s13  ;;  %p144_p10 = scmp.ne.s32.totalorder %s1295_s26, %s1291_s0 }
  0x1d   : > { %p44_p9 = scmp.eq.s32.totalorder %s43_s19, 0  ;;  %p1460_p11 = por %p139_p8, %p138_p7 }
  0x1e   : > { %s1455_s20 = scalar_select %p126_p6, %s1299_s1, %s128_s18  }
  0x1f   : > { %s1458_s21 = scalar_select %p44_p9, %s1323_s7, %s46_s14  }
  0x20   : > { %1742 = sst [smem:[#allocation22_spill]] %s1455_s20  ;;  %p145_p12 = scmp.eq.s32.totalorder %s749_s10, 1 }
  0x21   : > { %1743 = sst [smem:[#allocation23_spill]] %s1458_s21  ;;  %p1732_p0 = scmp.lt.s32.totalorder %s1327_s8, 2 }
  0x22   : > { %p1466_p2 = por %p145_p12, %p144_p10  ;;  %s165_s24 = sand.u32 1, %s1323_s7  }
  0x23   : > { %s752_s25 = sshll.u32 %s165_s24, 7  ;;  %p1475_p6 = pnand %p1732_p0, %p1436_p4 }
  0x24   : > { %s1745_s23 = scalar_select %p1466_p2, 1, 0 }
  0x25   : > { %s1009_s12 = scalar_select %p1436_p4, [#allocation3], [#allocation11] }
  0x26   : > { %1746 = sst [smem:[#allocation24_spill]] %s1745_s23  ;;  %s169_s13 = scalar_lea.vmem [#allocation5], %s752_s25 }
  0x27   : > { %s1010_s10 = scalar_select %p1436_p4, %s1327_s8, 0 }
  0x28   : > { %s1779_s12 = smov (!%p1732_p0, %s1009_s12), [#allocation13]  ;;  %s1488_s14 = sshll.u32 %s169_s13, 4 }
  0x29   : > { %s1781_s10 = smov (!%p1732_p0, %s1010_s10), 0  ;;  %1748 = sst [smem:[#allocation25_spill]] %s1488_s14 }
  0x2a   : > { %s170_s16 = sld [smem:[%s1779_s12 + %s1781_s10]]  ;;  %p758_p7 = scmp.ge.s32.totalorder %s1327_s8, 1 }
  0x2b   : > { %p217_p8 = scmp.lt.s32.totalorder %s1327_s8, 3  ;;  %s1750_s2 = sld [smem:[#allocation26_spill]] }
  0x2c   : > { %s69_s20 = sld [smem:[#allocation4 + %s1327_s8]]  ;;  %s166_s13 = scalar_lea.sflag [#allocation6], %s165_s24 }
  0x2d   : > { %p1493_p9 = pnand %p758_p7, %p217_p8  ;;  %s70_s25 = sld [smem:[#allocation4 + %s1424_s11]] }
  0x2e   : > { %p1151_p10 = pneg %p1475_p6 }
  0x30   : > { %s863_s19 = sshll.u32 %s170_s16, 7 }
  0x31   : > { %s175_s7 = scalar_lea.hbm %s1750_s2, %s863_s19  ;;  %s1154_s16 = scalar_lea.hbm %s1750_s2, 256 }
  0x32   : > { %s176_s1 = sshll.u32 %s175_s7, 4  ;;  %s177_s1 = int_to_ptr.hbm [resolvable:$true] %s176_s1 }
  0x33   : > { %s1147_s23 = sshra.s32 %s177_s1, 4  ;;  %s1148_s23 = int_to_ptr.hbm [resolvable:$true] %s1147_s23 }
  0x34   : > { %s1149_s12 = scalar_lea.hbm %s1148_s23, 128  ;;  %p1155_p8 = scmp.lt.s32.totalorder %s1148_s23, %s1750_s2 }
  0x35   : > { %p1150_p4 = scmp.ne.s32.totalorder %s1148_s23, %s1149_s12  ;;  %p1156_p13 = scmp.lt.s32.totalorder %s1154_s16, %s1149_s12 }
  0x37   : > { %p1152_p12 = pnand %p1151_p10, %p1150_p4  ;;  %p1157_p0 = por %p1156_p13, %p1155_p8 }
  0x39   : > { %p1153_p7 = pneg %p1152_p12 }
  0x3b   : > { %p1158_p1 = pnand %p1157_p0, %p1153_p7 }
  0x3d   : > { %1161 = shalt.err (!%p1158_p1)
}
  0x3e   : > { %s1734_s7 = smov 64   ;;  %s1751_s24 = sld [smem:[#allocation25_spill]] }
  0x3f   : > { %s1735_s0 = smov 4   ;;  %p81_p1 = scmp.ne.s32.totalorder %s1311_s29, %s1307_s28 }
  0x40   : > { %p87_p13 = scmp.ne.s32.totalorder %s1307_s28, %s1303_s27  ;;  %s74_s14 = sadd.s32 1, %s1311_s29 }
  0x41   : > { %s188_s15 = sand.u32 1, %s1311_s29   ;;  %s71_s12 = ssub.s32 %s69_s20, %s70_s25 }
  0x42   : > { %p1524_p0 = por %p87_p13, %p60_p3  ;;  %p1754_p4 = scmp.eq.s32.totalorder %s1327_s8, 0 }
  0x43   : > { %p72_p12 = scmp.eq.s32.totalorder %s71_s12, 0  ;;  %s755_s30 = sshll.u32 %s188_s15, 6 }
  0x44   : > { %s1752_s23 = int_to_ptr.vmem [resolvable:$true] %s1751_s24  ;;  %p83_p10 = por %p81_p1, %p1754_p4 }
  0x45   : > { %1024 = dma.hbm_to_vmem [thread:$0]  (!%p1475_p6), %s177_s1, 2048, %s1752_s23, %s166_s13, %s1734_s7, %s1734_s7, %s1735_s0  }
  0x46   : > { %p1755_p7 = scmp.lt.s32.totalorder %s1327_s8, 2  ;;  %s192_s20 = scalar_lea.vmem [#allocation8], %s755_s30 }
  0x47   : > { %s1538_s1 = scalar_select %p72_p12, %s1311_s29, %s74_s14  }
  0x48   : > { %p1533_p8 = pnand %p1755_p7, %p83_p10  ;;  %p1757_p6 = pmov %p1755_p7 }
  0x49   : > { %s1012_s27 = scalar_select %p83_p10, [#allocation4], [#allocation12] }
  0x4a   : > { %s1013_s13 = scalar_select %p83_p10, %s1327_s8, 0 }
  0x4b   : > { %s1783_s27 = smov (!%p1757_p6, %s1012_s27), [#allocation14]  ;;  %p1758_p3 = pmov %p1757_p6 }
  0x4c   : > { %s201_s25 = sshll.u32 %s192_s20, 4  ;;  %s189_s14 = scalar_lea.sflag [#allocation9], %s188_s15  ;;  %s202_s25 = int_to_ptr.vmem [resolvable:$true] %s201_s25 }
  0x4d   : > { %s1785_s13 = smov (!%p1758_p3, %s1013_s13), 0  ;;  %p1181_p13 = pneg %p1533_p8 }
  0x4e   : > { %s193_s16 = sld [smem:[%s1783_s27 + %s1785_s13]]  ;;  %s1184_s13 = scalar_lea.hbm %s1723_s3, 128 }
  0x54   : > { %s864_s21 = sshll.u32 %s193_s16, 6 }
  0x55   : > { %s198_s12 = scalar_lea.hbm %s1723_s3, %s864_s21 }
  0x56   : > { %s199_s7 = sshll.u32 %s198_s12, 4  ;;  %s200_s7 = int_to_ptr.hbm [resolvable:$true] %s199_s7 }
  0x57   : > { %s1177_s0 = sshra.s32 %s200_s7, 4  ;;  %s1178_s0 = int_to_ptr.hbm [resolvable:$true] %s1177_s0 }
  0x58   : > { %s1179_s2 = scalar_lea.hbm %s1178_s0, 64  ;;  %p1185_p12 = scmp.lt.s32.totalorder %s1178_s0, %s1723_s3 }
  0x59   : > { %p1180_p1 = scmp.ne.s32.totalorder %s1178_s0, %s1179_s2  ;;  %p1186_p7 = scmp.lt.s32.totalorder %s1184_s13, %s1179_s2 }
  0x5b   : > { %p1182_p4 = pnand %p1181_p13, %p1180_p1  ;;  %p1187_p6 = por %p1186_p7, %p1185_p12 }
  0x5d   : > { %p1183_p10 = pneg %p1182_p4 }
  0x5f   : > { %p1188_p3 = pnand %p1187_p6, %p1183_p10 }
  0x61   : > { %1191 = shalt.err (!%p1188_p3)
}
  0x62   : > { %s1759_s15 = smov 4   ;;  %s1760_s21 = smov 64  }
  0x63   : > { %1029 = dma.hbm_to_vmem [thread:$0]  (!%p1533_p8), %s200_s7, 1024, %s202_s25, %s189_s14, %s1760_s21, %s1760_s21, %s1759_s15  }
  0x64   : > { %221 = sbr.rel (%p1493_p9) target bundleno = 340 (0x154), region = 32  ;;  %s223_s24 = sand.u32 (!%p1493_p9), 1, %s1319_s6  }
  0x65   : > { %s759_s23 = sshll.u32 (!%p1493_p9), %s223_s24, 7  ;;  %s224_s12 = scalar_lea.sflag (!%p1493_p9), [#allocation6], %s223_s24 }
  0x66   : > { %s1564_s27 = scalar_lea.vmem (!%p1493_p9), [#allocation5], %s759_s23 }
  0x69   : > { %1278 = dma.done.wait (%p1444_p5), %s224_s12, 2048  }
  0x6a   : > { %1280 = vsyncadd (%p1444_p5), %s224_s12, 4294965248  ;;  %s233_s2 = sand.u32 1, %s1307_s28  }
  0x6b   : > { %s760_s0 = sshll.u32 %s233_s2, 6  ;;  %s234_s7 = scalar_lea.sflag [#allocation9], %s233_s2 }
  0x6c   : > { %s1571_s10 = scalar_lea.vmem [#allocation8], %s760_s0 }
  0x6d   : > { %1282 = dma.done.wait (%p1524_p0), %s234_s7, 1024  }
  0x6e   : > { %1284 = vsyncadd (%p1524_p0), %s234_s7, 4294966272  ;;  %s273_s18 = sld [smem:[#allocation4 + %s1420_s9]]  ;;  %v888_v0 = vld [vmem:[%s1571_s10 + $0x38] sm:$0xff]  ;;  %v887_v1 = vld [vmem:[%s1571_s10 + $0x30] sm:$0xff]  ;;  %s267_s14 = sand.u32 1, %s1295_s26  }
  0x6f   : > { %475 = vmatpush.bf16.msra.mxu0 %v888_v0  ;;  %985 = vmatpush.bf16.msra.mxu1 %v888_v0  ;;  %v886_v2 = vld [vmem:[%s1571_s10 + $0x28] sm:$0xff]  ;;  %v885_v3 = vld [vmem:[%s1571_s10 + $0x20] sm:$0xff]  ;;  %v884_v4 = vld [vmem:[%s1571_s10 + $0x18] sm:$0xff]  ;;  %s761_s16 = sshll.u32 %s267_s14, 7  ;;  %s889_s15 = sshll.u32 %s1420_s9, 7 }
  0x70   : > { %986 = vmatpush.bf16.msra.mxu2 %v888_v0  ;;  %987 = vmatpush.bf16.msra.mxu3 %v888_v0  ;;  %v883_v5 = vld [vmem:[%s1571_s10 + $0x10] sm:$0xff]  ;;  %v882_v6 = vld [vmem:[%s1571_s10 + $0x8] sm:$0xff]  ;;  %v881_v7 = vld [vmem:[%s1571_s10] sm:$0xff]  ;;  %s1622_s20 = scalar_lea.vmem [#allocation10], %s761_s16  ;;  %s640_s23 = scalar_lea.hbm %s1725_s5, %s889_s15 }
  0x71   : > { %v865_v8 = vld [vmem:[%s1564_s27] sm:$0xff]  ;;  %v866_v12 = vld [vmem:[%s1564_s27 + $0x8] sm:$0xff]  ;;  %v867_v16 = vld [vmem:[%s1564_s27 + $0x10] sm:$0xff]  ;;  %s641_s12 = sshll.u32 %s1622_s20, 4  ;;  %s629_s9 = scalar_lea.sflag [#allocation7], %s267_s14  ;;  %s642_s12 = int_to_ptr.vmem [resolvable:$true] %s641_s12 }
  0x72   : > { %v869_v9 = vld [vmem:[%s1564_s27 + $0x20] sm:$0xff]  ;;  %v870_v13 = vld [vmem:[%s1564_s27 + $0x28] sm:$0xff]  ;;  %v871_v17 = vld [vmem:[%s1564_s27 + $0x30] sm:$0xff] }
  0x73   : > { %476 = vmatpush.bf16.msra.mxu0 %v887_v1  ;;  %988 = vmatpush.bf16.msra.mxu1 %v887_v1  ;;  %v873_v10 = vld [vmem:[%s1564_s27 + $0x40] sm:$0xff]  ;;  %v874_v14 = vld [vmem:[%s1564_s27 + $0x48] sm:$0xff]  ;;  %v875_v18 = vld [vmem:[%s1564_s27 + $0x50] sm:$0xff] }
  0x74   : > { %p274_p5 = scmp.lt.s32.totalorder %s273_s18, 1  ;;  %989 = vmatpush.bf16.msra.mxu2 %v887_v1  ;;  %990 = vmatpush.bf16.msra.mxu3 %v887_v1  ;;  %v877_v11 = vld [vmem:[%s1564_s27 + $0x60] sm:$0xff]  ;;  %v878_v15 = vld [vmem:[%s1564_s27 + $0x68] sm:$0xff]  ;;  %v879_v19 = vld [vmem:[%s1564_s27 + $0x70] sm:$0xff] }
  0x75   : > { %v868_v20 = vld [vmem:[%s1564_s27 + $0x18] sm:$0xff] }
  0x76   : > { %s1787_s18 = smov (!%p274_p5, %s273_s18), 1  ;;  %v872_v21 = vld [vmem:[%s1564_s27 + $0x38] sm:$0xff] }
  0x77   : > { %s276_s25 = scalar_lea.vmem %s1724_s4, %s1787_s18  ;;  %477 = vmatpush.bf16.msra.mxu0 %v886_v2  ;;  %991 = vmatpush.bf16.msra.mxu1 %v886_v2  ;;  %v876_v22 = vld [vmem:[%s1564_s27 + $0x58] sm:$0xff]  ;;  %s1227_s18 = scalar_lea.hbm %s1725_s5, 256 }
  0x78   : > { %992 = vmatpush.bf16.msra.mxu2 %v886_v2  ;;  %993 = vmatpush.bf16.msra.mxu3 %v886_v2  ;;  %v880_v23 = vld [vmem:[%s1564_s27 + $0x78] sm:$0xff]  ;;  %s643_s27 = sshll.u32 %s640_s23, 4  ;;  %s644_s27 = int_to_ptr.hbm [resolvable:$true] %s643_s27 }
  0x79   : > { %v1614_v26 = vld [vmem:[%s276_s25] ss:$0 sm:$0xff]  ;;  %s1221_s2 = sshra.s32 %s644_s27, 4  ;;  %s1222_s2 = int_to_ptr.hbm [resolvable:$true] %s1221_s2 }
  0x7a   : > { %s1223_s0 = scalar_lea.hbm %s1222_s2, 128  ;;  %p1228_p1 = scmp.lt.s32.totalorder %s1222_s2, %s1725_s5 }
  0x7b   : > { %478 = vmatpush.bf16.msra.mxu0 %v885_v3  ;;  %994 = vmatpush.bf16.msra.mxu1 %v885_v3  ;;  %p1224_p9 = scmp.ne.s32.totalorder %s1222_s2, %s1223_s0  ;;  %p1229_p13 = scmp.lt.s32.totalorder %s1227_s18, %s1223_s0 }
  0x7c   : > { %995 = vmatpush.bf16.msra.mxu2 %v885_v3  ;;  %996 = vmatpush.bf16.msra.mxu3 %v885_v3 }
  0x7d   : > { %p1225_p0 = pnand %p1224_p9, %p1460_p11  ;;  %p1230_p4 = por %p1229_p13, %p1228_p1 }
  0x7f   : > { %479 = vmatpush.bf16.msra.mxu0 %v884_v4  ;;  %997 = vmatpush.bf16.msra.mxu1 %v884_v4  ;;  %p1226_p8 = pneg %p1225_p0 }
  0x80   : > { %998 = vmatpush.bf16.msra.mxu2 %v884_v4  ;;  %999 = vmatpush.bf16.msra.mxu3 %v884_v4 }
  0x81   : > { %p1231_p10 = pnand %p1230_p4, %p1226_p8 }
  0x83   : > { %480 = vmatpush.bf16.msra.mxu0 %v883_v5  ;;  %1000 = vmatpush.bf16.msra.mxu1 %v883_v5 }
  0x84   : > { %1001 = vmatpush.bf16.msra.mxu2 %v883_v5  ;;  %1002 = vmatpush.bf16.msra.mxu3 %v883_v5 }
  0x87   : > { %481 = vmatpush.bf16.msra.mxu0 %v882_v6  ;;  %1003 = vmatpush.bf16.msra.mxu1 %v882_v6 }
  0x88   : > { %1004 = vmatpush.bf16.msra.mxu2 %v882_v6  ;;  %1005 = vmatpush.bf16.msra.mxu3 %v882_v6 }
  0x8b   : > { %482 = vmatpush.bf16.msra.mxu0 %v881_v7  ;;  %1006 = vmatpush.bf16.msra.mxu1 %v881_v7 }
  0x8c   : > { %1007 = vmatpush.bf16.msra.mxu2 %v881_v7  ;;  %1008 = vmatpush.bf16.msra.mxu3 %v881_v7 }
  0x8e   : > { %483 = vmatmul.bf16.vlgmr.msra.gmra.mxu0 %v865_v8  ;;  %503 = vmatmul.bf16.vlgmr.msra.gmra.mxu1 %v869_v9 }
  0x8f   : > { %523 = vmatmul.bf16.vlgmr.msra.gmra.mxu2 %v873_v10  ;;  %543 = vmatmul.bf16.vlgmr.msra.gmra.mxu3 %v877_v11 }
  0x9e   : > { %488 = vmatmul.bf16.gmra.mxu0 %v866_v12  ;;  %508 = vmatmul.bf16.gmra.mxu1 %v870_v13 }
  0x9f   : > { %528 = vmatmul.bf16.gmra.mxu2 %v874_v14  ;;  %548 = vmatmul.bf16.gmra.mxu3 %v878_v15 }
  0xae   : > { %493 = vmatmul.bf16.gmra.mxu0 %v867_v16  ;;  %513 = vmatmul.bf16.gmra.mxu1 %v871_v17 }
  0xaf   : > { %533 = vmatmul.bf16.gmra.mxu2 %v875_v18  ;;  %553 = vmatmul.bf16.gmra.mxu3 %v879_v19 }
  0xbe   : > { %498 = vmatmul.bf16.gmra.mxu0 %v868_v20  ;;  %518 = vmatmul.bf16.gmra.mxu1 %v872_v21 }
  0xbf   : > { %538 = vmatmul.bf16.gmra.mxu2 %v876_v22  ;;  %558 = vmatmul.bf16.gmra.mxu3 %v880_v23 }
 0x10b   : > { %v484_v24 = vpop.f32.mrf.mxu0  ;;  %v504_v25 = vpop.f32.mrf.mxu1 }
 0x10c   : > { %v485_v31 = vadd.f32 %v1614_v26, %v484_v24  ;;  %v505_v32 = vadd.f32 %v1614_v26, %v504_v25 }
 0x112   : > { %v524_v27 = vpop.f32.mrf.mxu2  ;;  %v544_v28 = vpop.f32.mrf.mxu3 }
 0x113   : > { %v486_v29 = vpop.f32.mrf.mxu0  ;;  %v506_v30 = vpop.f32.mrf.mxu1  ;;  %v525_v39 = vadd.f32 %v1614_v26, %v524_v27  ;;  %v545_v40 = vadd.f32 %v1614_v26, %v544_v28 }
 0x114   : > { %v487_v33 = vadd.f32 %v1614_v26, %v486_v29  ;;  %v507_v34 = vadd.f32 %v1614_v26, %v506_v30 }
 0x116   : > { %v893_v35 = vpack.c.bf16 %v487_v33, %v485_v31  ;;  %v913_v36 = vpack.c.bf16 %v507_v34, %v505_v32 }
 0x118   : > { %894 = vst [vmem:[%s1622_s20] sm:$0xff] %v893_v35  }
 0x119   : > { %973 = vst [vmem:[%s1622_s20 + $0x20] sm:$0xff] %v913_v36  }
 0x11a   : > { %v526_v37 = vpop.f32.mrf.mxu2  ;;  %v546_v38 = vpop.f32.mrf.mxu3 }
 0x11b   : > { %v527_v41 = vadd.f32 %v1614_v26, %v526_v37  ;;  %v547_v42 = vadd.f32 %v1614_v26, %v546_v38  ;;  %v489_v43 = vpop.f32.mrf.mxu0  ;;  %v509_v44 = vpop.f32.mrf.mxu1 }
 0x11c   : > { %v490_v51 = vadd.f32 %v1614_v26, %v489_v43  ;;  %v510_v52 = vadd.f32 %v1614_v26, %v509_v44 }
 0x11d   : > { %v933_v45 = vpack.c.bf16 %v527_v41, %v525_v39  ;;  %v953_v46 = vpack.c.bf16 %v547_v42, %v545_v40 }
 0x11f   : > { %977 = vst [vmem:[%s1622_s20 + $0x40] sm:$0xff] %v933_v45  }
 0x120   : > { %981 = vst [vmem:[%s1622_s20 + $0x60] sm:$0xff] %v953_v46  }
 0x122   : > { %v529_v47 = vpop.f32.mrf.mxu2  ;;  %v549_v48 = vpop.f32.mrf.mxu3 }
 0x123   : > { %v491_v49 = vpop.f32.mrf.mxu0  ;;  %v511_v50 = vpop.f32.mrf.mxu1  ;;  %v530_v59 = vadd.f32 %v1614_v26, %v529_v47  ;;  %v550_v60 = vadd.f32 %v1614_v26, %v549_v48 }
 0x124   : > { %v492_v53 = vadd.f32 %v1614_v26, %v491_v49  ;;  %v512_v54 = vadd.f32 %v1614_v26, %v511_v50 }
 0x126   : > { %v898_v55 = vpack.c.bf16 %v492_v53, %v490_v51  ;;  %v918_v56 = vpack.c.bf16 %v512_v54, %v510_v52 }
 0x128   : > { %970 = vst [vmem:[%s1622_s20 + $0x8] sm:$0xff] %v898_v55  }
 0x129   : > { %974 = vst [vmem:[%s1622_s20 + $0x28] sm:$0xff] %v918_v56  }
 0x12a   : > { %v531_v57 = vpop.f32.mrf.mxu2  ;;  %v551_v58 = vpop.f32.mrf.mxu3 }
 0x12b   : > { %v532_v61 = vadd.f32 %v1614_v26, %v531_v57  ;;  %v552_v62 = vadd.f32 %v1614_v26, %v551_v58  ;;  %v494_v63 = vpop.f32.mrf.mxu0  ;;  %v514_v0 = vpop.f32.mrf.mxu1 }
 0x12c   : > { %v495_v7 = vadd.f32 %v1614_v26, %v494_v63  ;;  %v515_v8 = vadd.f32 %v1614_v26, %v514_v0 }
 0x12d   : > { %v938_v1 = vpack.c.bf16 %v532_v61, %v530_v59  ;;  %v958_v2 = vpack.c.bf16 %v552_v62, %v550_v60 }
 0x12f   : > { %978 = vst [vmem:[%s1622_s20 + $0x48] sm:$0xff] %v938_v1  }
 0x130   : > { %982 = vst [vmem:[%s1622_s20 + $0x68] sm:$0xff] %v958_v2  }
 0x132   : > { %v534_v3 = vpop.f32.mrf.mxu2  ;;  %v554_v4 = vpop.f32.mrf.mxu3 }
 0x133   : > { %v496_v5 = vpop.f32.mrf.mxu0  ;;  %v516_v6 = vpop.f32.mrf.mxu1  ;;  %v535_v15 = vadd.f32 %v1614_v26, %v534_v3  ;;  %v555_v16 = vadd.f32 %v1614_v26, %v554_v4 }
 0x134   : > { %v497_v9 = vadd.f32 %v1614_v26, %v496_v5  ;;  %v517_v10 = vadd.f32 %v1614_v26, %v516_v6 }
 0x136   : > { %v903_v11 = vpack.c.bf16 %v497_v9, %v495_v7  ;;  %v923_v12 = vpack.c.bf16 %v517_v10, %v515_v8 }
 0x138   : > { %971 = vst [vmem:[%s1622_s20 + $0x10] sm:$0xff] %v903_v11  }
 0x139   : > { %975 = vst [vmem:[%s1622_s20 + $0x30] sm:$0xff] %v923_v12  }
 0x13a   : > { %v536_v13 = vpop.f32.mrf.mxu2  ;;  %v556_v14 = vpop.f32.mrf.mxu3 }
 0x13b   : > { %v537_v17 = vadd.f32 %v1614_v26, %v536_v13  ;;  %v557_v18 = vadd.f32 %v1614_v26, %v556_v14  ;;  %v499_v19 = vpop.f32.mrf.mxu0  ;;  %v519_v20 = vpop.f32.mrf.mxu1 }
 0x13c   : > { %v500_v28 = vadd.f32 %v1614_v26, %v499_v19  ;;  %v520_v29 = vadd.f32 %v1614_v26, %v519_v20 }
 0x13d   : > { %v943_v21 = vpack.c.bf16 %v537_v17, %v535_v15  ;;  %v963_v22 = vpack.c.bf16 %v557_v18, %v555_v16 }
 0x13f   : > { %979 = vst [vmem:[%s1622_s20 + $0x50] sm:$0xff] %v943_v21  }
 0x140   : > { %983 = vst [vmem:[%s1622_s20 + $0x70] sm:$0xff] %v963_v22  }
 0x142   : > { %v539_v23 = vpop.f32.mrf.mxu2  ;;  %v559_v24 = vpop.f32.mrf.mxu3 }
 0x143   : > { %v501_v25 = vpop.f32.mrf.mxu0  ;;  %v521_v27 = vpop.f32.mrf.mxu1  ;;  %v540_v36 = vadd.f32 %v1614_v26, %v539_v23  ;;  %v560_v37 = vadd.f32 %v1614_v26, %v559_v24 }
 0x144   : > { %v502_v30 = vadd.f32 %v1614_v26, %v501_v25  ;;  %v522_v31 = vadd.f32 %v1614_v26, %v521_v27 }
 0x146   : > { %v908_v32 = vpack.c.bf16 %v502_v30, %v500_v28  ;;  %v928_v33 = vpack.c.bf16 %v522_v31, %v520_v29 }
 0x148   : > { %972 = vst [vmem:[%s1622_s20 + $0x18] sm:$0xff] %v908_v32  }
 0x149   : > { %976 = vst [vmem:[%s1622_s20 + $0x38] sm:$0xff] %v928_v33  }
 0x14a   : > { %v541_v34 = vpop.f32.mrf.mxu2  ;;  %v561_v35 = vpop.f32.mrf.mxu3 }
 0x14b   : > { %v542_v38 = vadd.f32 %v1614_v26, %v541_v34  ;;  %v562_v39 = vadd.f32 %v1614_v26, %v561_v35 }
 0x14d   : > { %v948_v40 = vpack.c.bf16 %v542_v38, %v540_v36  ;;  %v968_v41 = vpack.c.bf16 %v562_v39, %v560_v37 }
 0x14f   : > { %980 = vst [vmem:[%s1622_s20 + $0x58] sm:$0xff] %v948_v40  }
 0x150   : > { %984 = vst [vmem:[%s1622_s20 + $0x78] sm:$0xff] %v968_v41  }
 0x151   : > { %1234 = shalt.err (!%p1231_p10)
}
 0x152   : > { %s1333_s25 = smov 64   ;;  %s1334_s14 = smov 4  }
 0x153   : > { %1017 = dma.vmem_to_hbm [thread:$0]  (%p1460_p11), %s642_s12, 2048, %s644_s27, %s629_s9, %s1333_s25, %s1333_s25, %s1334_s14  }
 0x154 PF: > { %s1761_s30 = sld [smem:[#allocation19_spill]]  ;;  %p1763_p12 = scmp.ge.s32.totalorder %s1327_s8, 2 }
 0x156   : > { %p1031_p7 = pnand %p1763_p12, %p1466_p2 }
 0x158   : > { %p1032_p6 = pneg %p1031_p7 }
 0x15a   : > { %s658_s16 = sand.u32 1, %s1761_s30  }
 0x15b   : > { %s659_s20 = scalar_lea.sflag [#allocation7], %s658_s16 }
 0x15c   : > { %1286 = dma.done.wait (%p1032_p6), %s659_s20, 2048  }
 0x15d   : > { %1288 = vsyncadd (%p1032_p6), %s659_s20, 4294965248  ;;  %s1764_s15 = sld [smem:[#allocation20_spill]]  ;;  %s1766_s22 = smov %s1538_s1 }
 0x15e   : > { %s1765_s21 = sld [smem:[#allocation22_spill]]  ;;  %p34_p11 = scmp.ge.s32.totalorder %s1424_s11, 4  }
 0x15f   : > { %s1767_s24 = sld [smem:[#allocation21_spill]]  ;;  %s1769_s0 = smov %s1295_s26 }
 0x160   : > { %s1768_s7 = sld [smem:[#allocation23_spill]]  ;;  %s1772_s27 = smov %s1307_s28 }
 0x161   : > { %s1773_s28 = smov %s1311_s29  ;;  %s1774_s29 = smov %s1766_s22 }
 0x162   : > { %s1775_s30 = smov %s1319_s6  ;;  %s1777_s8 = smov %s1424_s11 }
 0x163   : > { %s1770_s26 = smov %s1764_s15  ;;  %36 = sbr.rel (!%p34_p11) target bundleno = 18 (0x12), region = 93 }
 0x164   : > { %s1771_s1 = smov %s1765_s21 }
 0x165   : > { %s1776_s6 = smov %s1767_s24 }
 0x168   :  { %665 = vsyncpa [#allocation6], 1 }
 0x169   :  { %667 = vsyncpa [#allocation6 + $0x1], 1 }
 0x16a   :  { %668 = vsyncpa [#allocation9], 1 }
 0x16b   :  { %670 = vsyncpa [#allocation9 + $0x1], 1 }
 0x16c   :  { %671 = vsyncpa [#allocation7], 1 }
 0x16d   :  { %673 = vsyncpa [#allocation7 + $0x1], 1 }

</bundles_post_ra>
